<compile_context>
chip_gen: v7x
topology: tpu7x:2x2x1
jax: 0.10.0
libtpu: 0.0.40
codegen_flags: <defaults>
</compile_context>

<pallas_src>
import functools

import jax
import jax.numpy as jnp
from jax.experimental import pallas as pl
from jax.experimental.pallas import tpu as pltpu

ALPHA = 0.6
GAMMA = 0.2

_LANES = 128
_SUBLANES = 8
# (2048, 128) f32 = 1 MiB per input per buffer; 2 inputs x 2 pipeline buffers
# = 4 MiB, comfortably within v5e/v6e/v7x scoped-VMEM defaults.
_MAX_BLOCK_ROWS = 2048


def _bce_focal_kernel(p_ref, t_ref, out_ref, *, alpha, gamma, block_rows,
                      total_n, needs_mask):
    p = p_ref[...].astype(jnp.float32)
    t = t_ref[...].astype(jnp.float32)

    # p in (0, 1)  =>  x ** gamma == exp(gamma * log(x)); reuse the logs.
    lp = jnp.log(p)
    l1p = jnp.log(1.0 - p)
    pow_1mp = jnp.exp(gamma * l1p)   # (1 - p) ** gamma
    pow_p = jnp.exp(gamma * lp)      # p ** gamma

    loss = (-alpha * pow_1mp * t * lp
            - (1.0 - alpha) * pow_p * (1.0 - t) * l1p)

    if needs_mask:
        i = pl.program_id(0)
        row = jax.lax.broadcasted_iota(jnp.int32, (block_rows, _LANES), 0)
        lane = jax.lax.broadcasted_iota(jnp.int32, (block_rows, _LANES), 1)
        gidx = (i * block_rows + row) * _LANES + lane
        loss = jnp.where(gidx < total_n, loss, 0.0)

    # Per-block partial sum over the sublane axis only; keeps the output
    # lane-dense (1, 128) and the grid axis fully parallel (v7x megacore).
    out_ref[...] = jnp.sum(loss, axis=0, keepdims=True)


def bce_focal_loss(logits, target, *, alpha=ALPHA, gamma=GAMMA):
    """Pallas TPU implementation of BCEFocalLoss.forward (reduction='mean')."""
    assert logits.shape == target.shape
    total_n = int(logits.size)

    # Flatten to (M, 128) rows; pad rows so M_padded is a multiple of the
    # block row count (block rows are a multiple of 8 and at most 2048).
    m = pl.cdiv(total_n, _LANES)
    m_pad8 = pl.cdiv(m, _SUBLANES) * _SUBLANES
    block_rows = m_pad8 if m_pad8 <= _MAX_BLOCK_ROWS else _MAX_BLOCK_ROWS
    m_padded = pl.cdiv(m_pad8, block_rows) * block_rows
    n_tiles = m_padded // block_rows
    padded_n = m_padded * _LANES
    needs_mask = padded_n != total_n

    p_flat = logits.reshape(-1)
    t_flat = target.reshape(-1)
    if needs_mask:
        # Pad p with 0.5 (keeps log() finite pre-mask) and target with 0.
        p_flat = jnp.pad(p_flat, (0, padded_n - total_n), constant_values=0.5)
        t_flat = jnp.pad(t_flat, (0, padded_n - total_n), constant_values=0.0)
    p2d = p_flat.reshape(m_padded, _LANES)
    t2d = t_flat.reshape(m_padded, _LANES)

    kernel = functools.partial(
        _bce_focal_kernel, alpha=float(alpha), gamma=float(gamma),
        block_rows=block_rows, total_n=total_n, needs_mask=needs_mask)

    in_bytes = (p2d.size * p2d.dtype.itemsize
                + t2d.size * t2d.dtype.itemsize)
    cost = pl.CostEstimate(
        flops=10 * total_n,
        transcendentals=4 * total_n,
        bytes_accessed=in_bytes + n_tiles * _LANES * 4)

    partials = pl.pallas_call(
        kernel,
        out_shape=jax.ShapeDtypeStruct((n_tiles, _LANES), jnp.float32),
        grid_spec=pltpu.PrefetchScalarGridSpec(
            num_scalar_prefetch=0,
            grid=(n_tiles,),
            in_specs=[
                pl.BlockSpec((block_rows, _LANES), lambda i: (i, 0)),
                pl.BlockSpec((block_rows, _LANES), lambda i: (i, 0)),
            ],
            out_specs=pl.BlockSpec((1, _LANES), lambda i: (i, 0)),
        ),
        compiler_params=pltpu.CompilerParams(
            dimension_semantics=("parallel",)),
        cost_estimate=cost,
    )(p2d, t2d)

    # Tiny final reduce of (n_tiles, 128) partials + mean normalization.
    return jnp.sum(partials) / jnp.float32(total_n)


def _reference(logits, target, alpha=ALPHA, gamma=GAMMA):
    loss = (-alpha * (1.0 - logits) ** gamma * target * jnp.log(logits)
            - (1.0 - alpha) * logits ** gamma * (1.0 - target)
            * jnp.log(1.0 - logits))
    return jnp.mean(loss)


if __name__ == "__main__":
    key = jax.random.PRNGKey(0)
    k1, k2, k3, k4 = jax.random.split(key, 4)

    # NCHW input: (batch=2, C=4, 16, 16).  The PyTorch forward treats `logits`
    # as probabilities (it takes log(p) and log(1-p) directly), so generate
    # values strictly inside (0, 1).
    x = jax.nn.sigmoid(jax.random.normal(k1, (2, 4, 16, 16), dtype=jnp.float32))
    target = jax.random.bernoulli(k2, p=0.5, shape=(2, 4, 16, 16)).astype(
        jnp.float32)

    loss = jax.block_until_ready(bce_focal_loss(x, target))
    ref = _reference(x, target)
    assert jnp.allclose(loss, ref, rtol=1e-5, atol=1e-6), (loss, ref)

    # Secondary check: a shape whose element count is NOT a multiple of 1024
    # (exercises the padded / masked tail path).
    x2 = jax.nn.sigmoid(jax.random.normal(k3, (3, 5, 7, 11), dtype=jnp.float32))
    t2 = jax.random.bernoulli(k4, p=0.5, shape=(3, 5, 7, 11)).astype(
        jnp.float32)
    loss2 = jax.block_until_ready(bce_focal_loss(x2, t2))
    ref2 = _reference(x2, t2)
    assert jnp.allclose(loss2, ref2, rtol=1e-5, atol=1e-6), (loss2, ref2)

    print("KERNEL_OK")
</pallas_src>

<mosaic_0001>
module attributes {stable_mosaic.version = 11 : i64} {
  func.func @_bce_focal_kernel(%arg0: i32, %arg1: memref<16x128xf32, #tpu.memory_space<vmem>>, %arg2: memref<16x128xf32, #tpu.memory_space<vmem>>, %arg3: memref<1x128xf32, #tpu.memory_space<vmem>>) attributes {dimension_semantics = [#tpu.dimension_semantics<parallel>], iteration_bounds = array<i64: 1>, scalar_prefetch = 0 : i64, scratch_operands = 0 : i64, tpu.core_type = #tpu.core_type<tc>, window_params = [{transform_indices = @transform_0, window_bounds = array<i64: 16, 128>}, {transform_indices = @transform_1, window_bounds = array<i64: 16, 128>}, {transform_indices = @transform_2, window_bounds = array<i64: 1, 128>}]} {
    %c0 = arith.constant 0 : index
    %c0_0 = arith.constant 0 : index
    %0 = vector.load %arg1[%c0, %c0_0] : memref<16x128xf32, #tpu.memory_space<vmem>>, vector<16x128xf32>
    %c0_1 = arith.constant 0 : index
    %c0_2 = arith.constant 0 : index
    %1 = vector.load %arg2[%c0_1, %c0_2] : memref<16x128xf32, #tpu.memory_space<vmem>>, vector<16x128xf32>
    %2 = math.log %0 : vector<16x128xf32>
    %cst = arith.constant 1.000000e+00 : f32
    %3 = vector.broadcast %cst : f32 to vector<16x128xf32>
    %4 = arith.subf %3, %0 : vector<16x128xf32>
    %5 = math.log %4 : vector<16x128xf32>
    %cst_3 = arith.constant 2.000000e-01 : f32
    %6 = vector.broadcast %cst_3 : f32 to vector<16x128xf32>
    %7 = arith.mulf %6, %5 : vector<16x128xf32>
    %8 = math.exp %7 : vector<16x128xf32>
    %cst_4 = arith.constant 2.000000e-01 : f32
    %9 = vector.broadcast %cst_4 : f32 to vector<16x128xf32>
    %10 = arith.mulf %9, %2 : vector<16x128xf32>
    %11 = math.exp %10 : vector<16x128xf32>
    %cst_5 = arith.constant -6.000000e-01 : f32
    %12 = vector.broadcast %cst_5 : f32 to vector<16x128xf32>
    %13 = arith.mulf %12, %8 : vector<16x128xf32>
    %14 = arith.mulf %13, %1 : vector<16x128xf32>
    %15 = arith.mulf %14, %2 : vector<16x128xf32>
    %cst_6 = arith.constant 4.000000e-01 : f32
    %16 = vector.broadcast %cst_6 : f32 to vector<16x128xf32>
    %17 = arith.mulf %16, %11 : vector<16x128xf32>
    %cst_7 = arith.constant 1.000000e+00 : f32
    %18 = vector.broadcast %cst_7 : f32 to vector<16x128xf32>
    %19 = arith.subf %18, %1 : vector<16x128xf32>
    %20 = arith.mulf %17, %19 : vector<16x128xf32>
    %21 = arith.mulf %20, %5 : vector<16x128xf32>
    %22 = arith.subf %15, %21 : vector<16x128xf32>
    %cst_8 = arith.constant dense<0.000000e+00> : vector<128xf32>
    %23 = vector.multi_reduction <add>, %22, %cst_8 [0] : vector<16x128xf32> to vector<128xf32>
    %24 = vector.shape_cast %23 : vector<128xf32> to vector<1x128xf32>
    %c0_9 = arith.constant 0 : index
    %c0_10 = arith.constant 0 : index
    %25 = vector.load %arg3[%c0_9, %c0_10] : memref<1x128xf32, #tpu.memory_space<vmem>>, vector<1x128xf32>
    tpu.vector_store %arg3[%c0_9, %c0_10], %24 {strides = array<i32>} : memref<1x128xf32, #tpu.memory_space<vmem>>, vector<1x128xf32>,
    return
  }
  func.func @transform_0(%arg0: i32) -> (i32, i32) {
    %c0_i32 = arith.constant 0 : i32
    %c0_i32_0 = arith.constant 0 : i32
    return %arg0, %c0_i32 : i32, i32
  }
  func.func @transform_1(%arg0: i32) -> (i32, i32) {
    %c0_i32 = arith.constant 0 : i32
    %c0_i32_0 = arith.constant 0 : i32
    return %arg0, %c0_i32 : i32, i32
  }
  func.func @transform_2(%arg0: i32) -> (i32, i32) {
    %c0_i32 = arith.constant 0 : i32
    %c0_i32_0 = arith.constant 0 : i32
    return %arg0, %c0_i32 : i32, i32
  }
}

</mosaic_0001>

<bundles_post_ra>
// kernel: tpu_custom_call.1
= control target key start
LH: loop header
LB: loop body
LE: loop exit
PB: predicated region body
PF: predicated region fallthrough
CT: control target
= control target key end

     0   :  { %7 = vsyncpa [#allocation3], 0  ;;  %s255_s0 = inlined_call_operand.hbm [shape: f32[16,128], index: 0, kind: input, shape index: {}]   ;;  %s256_s1 = inlined_call_operand.hbm [shape: f32[16,128], index: 1, kind: input, shape index: {}]   ;;  %s257_s2 = inlined_call_operand.hbm [shape: f32[1,128], index: 2, kind: output, shape index: {}]  }
   0x1   :  { %8 = vsyncpa [#allocation6], 0 }
   0x2   :  { %9 = vsyncpa [#allocation4], 0  ;;  %s199_s9 = smov [#allocation2]   ;;  %s127_s13 = scalar_lea.hbm %s255_s0, 256 }
   0x3   :  { %s15_s10 = sshll.u32 %s199_s9, 4  ;;  %p128_p0 = scmp.ne.s32.totalorder %s255_s0, %s127_s13  ;;  %s16_s10 = int_to_ptr.vmem [resolvable:$true] %s15_s10 }
   0x4   :  { %p131_p1 = scmp.lt.u32.totalorder %s127_s13, %s255_s0 }
   0x6   :  { %p133_p2 = pnand %p131_p1, %p128_p0 }
   0x8   :  { %136 = shalt.err (!%p133_p2)
}
   0x9   :  { %s137_s18 = scalar_lea.vmem %s16_s10, 256  ;;  %p142_p4 = scmp.lt.s32.totalorder %s16_s10, %s16_s10 }
   0xa   :  { %p138_p3 = scmp.ne.s32.totalorder %s16_s10, %s137_s18  ;;  %p143_p5 = scmp.lt.s32.totalorder %s137_s18, %s137_s18 }
   0xc   :  { %p144_p6 = por %p143_p5, %p142_p4 }
   0xe   :  { %p145_p7 = pnand %p144_p6, %p138_p3 }
  0x10   :  { %148 = shalt.err (!%p145_p7)
}
  0x11   :  { %s200_s19 = smov 128   ;;  %s201_s20 = smov 8  }
  0x12   :  { %21 = dma.hbm_to_vmem [thread:$0]  %s255_s0, 256, %s16_s10, [#allocation3], %s200_s19, %s200_s19, %s201_s20  }
  0x13   :  { %s202_s23 = smov [#allocation5]   ;;  %s149_s27 = scalar_lea.hbm %s256_s1, 256 }
  0x14   :  { %s27_s24 = sshll.u32 %s202_s23, 4  ;;  %p150_p8 = scmp.ne.s32.totalorder %s256_s1, %s149_s27  ;;  %s28_s24 = int_to_ptr.vmem [resolvable:$true] %s27_s24 }
  0x15   :  { %p153_p9 = scmp.lt.u32.totalorder %s149_s27, %s256_s1 }
  0x17   :  { %p155_p10 = pnand %p153_p9, %p150_p8 }
  0x19   :  { %158 = shalt.err (!%p155_p10)
}
  0x1a   :  { %s159_s4 = scalar_lea.vmem %s28_s24, 256  ;;  %p164_p12 = scmp.lt.s32.totalorder %s28_s24, %s28_s24 }
  0x1b   :  { %p160_p11 = scmp.ne.s32.totalorder %s28_s24, %s159_s4  ;;  %p165_p13 = scmp.lt.s32.totalorder %s159_s4, %s159_s4 }
  0x1d   :  { %p166_p0 = por %p165_p13, %p164_p12 }
  0x1f   :  { %p167_p1 = pnand %p166_p0, %p160_p11 }
  0x21   :  { %170 = shalt.err (!%p167_p1)
}
  0x22   :  { %33 = dma.hbm_to_vmem [thread:$0]  %s256_s1, 256, %s28_s24, [#allocation6], %s200_s19, %s200_s19, %s201_s20  }
  0x23   :  { %193 = dma.done.wait [#allocation3], 256  }
  0x24   :  { %194 = vsyncadd [#allocation3], 4294967040 }
  0x25   :  { %195 = dma.done.wait [#allocation6], 256  }
  0x26   :  { %196 = vsyncadd [#allocation6], 4294967040  ;;  %v40_v0 = vld [vmem:[#allocation2] sm:$0xff]  ;;  %v41_v1 = vld [vmem:[#allocation2 + $0x8] sm:$0xff]  ;;  %s203_s1 = smov [#allocation7]  }
  0x27   :  { %111 = vlog2.f32 %v40_v0  ;;  %v48_v2 = vsub.f32 1.0, %v40_v0  ;;  %v49_v3 = vsub.f32 1.0, %v41_v1  ;;  %v42_v20 = vld [vmem:[#allocation5] sm:$0xff]  ;;  %v43_v21 = vld [vmem:[#allocation5 + $0x8] sm:$0xff]  ;;  %s96_s6 = sshll.u32 %s203_s1, 4  ;;  %s97_s6 = int_to_ptr.vmem [resolvable:$true] %s96_s6 }
  0x28   :  { %113 = vlog2.f32 %v41_v1  ;;  %v74_v22 = vsub.f32 1.0, %v42_v20  ;;  %v75_v24 = vsub.f32 1.0, %v43_v21  ;;  %s171_s7 = scalar_lea.vmem %s97_s6, 16  ;;  %s175_s8 = scalar_lea.vmem %s97_s6, 32 }
  0x29   :  { %115 = vlog2.f32 %v48_v2  ;;  %p172_p2 = scmp.ne.s32.totalorder %s97_s6, %s171_s7  ;;  %p176_p3 = scmp.lt.s32.totalorder %s97_s6, %s97_s6 }
  0x2a   :  { %117 = vlog2.f32 %v49_v3  ;;  %p177_p4 = scmp.lt.s32.totalorder %s175_s8, %s171_s7 }
  0x2c   :  { %p178_p5 = por %p177_p4, %p176_p3 }
  0x2e   :  { %p179_p6 = pnand %p178_p5, %p172_p2 }
  0x31   :  { %v112_v4 = vpop.eup %111 }
  0x32   :  { %v114_v5 = vpop.eup %113  ;;  %v45_v6 = vmul.f32 0.6931472, %v112_v4 }
  0x33   :  { %v116_v7 = vpop.eup %115  ;;  %v47_v8 = vmul.f32 0.6931472, %v114_v5 }
  0x34   :  { %v118_v9 = vpop.eup %117  ;;  %v51_v10 = vmul.f32 0.6931472, %v116_v7  ;;  %v60_v11 = vmul.f32 0.2, %v45_v6 }
  0x35   :  { %v53_v12 = vmul.f32 0.6931472, %v118_v9  ;;  %v61_v13 = vmul.f32 0.2, %v47_v8 }
  0x36   :  { %v54_v14 = vmul.f32 0.2, %v51_v10  ;;  %v62_v15 = vmul.f32 1.442695, %v60_v11 }
  0x37   :  { %v55_v16 = vmul.f32 0.2, %v53_v12  ;;  %v64_v17 = vmul.f32 1.442695, %v61_v13 }
  0x38   :  { %v56_v18 = vmul.f32 1.442695, %v54_v14  ;;  %119 = vpow2.f32 %v62_v15 }
  0x39   :  { %v58_v19 = vmul.f32 1.442695, %v55_v16  ;;  %121 = vpow2.f32 %v64_v17 }
  0x3a   :  { %123 = vpow2.f32 %v56_v18 }
  0x3b   :  { %125 = vpow2.f32 %v58_v19 }
  0x42   :  { %v120_v23 = vpop.eup %119 }
  0x43   :  { %v122_v25 = vpop.eup %121  ;;  %v72_v26 = vmul.f32 0.4, %v120_v23 }
  0x44   :  { %v124_v27 = vpop.eup %123  ;;  %v73_v28 = vmul.f32 0.4, %v122_v25 }
  0x45   :  { %v126_v29 = vpop.eup %125  ;;  %v66_v30 = vmul.f32 -0.6, %v124_v27  ;;  %v76_v31 = vmul.f32 %v74_v22, %v72_v26 }
  0x46   :  { %v67_v32 = vmul.f32 -0.6, %v126_v29  ;;  %v77_v33 = vmul.f32 %v75_v24, %v73_v28 }
  0x47   :  { %v68_v34 = vmul.f32 %v66_v30, %v42_v20  ;;  %v78_v35 = vmul.f32 %v76_v31, %v51_v10 }
  0x48   :  { %v69_v36 = vmul.f32 %v67_v32, %v43_v21  ;;  %v79_v37 = vmul.f32 %v77_v33, %v53_v12 }
  0x49   :  { %v70_v38 = vmul.f32 %v68_v34, %v45_v6 }
  0x4a   :  { %v71_v39 = vmul.f32 %v69_v36, %v47_v8 }
  0x4b   :  { %v80_v40 = vsub.f32 %v70_v38, %v78_v35 }
  0x4c   :  { %v81_v41 = vsub.f32 %v71_v39, %v79_v37 }
  0x4e   :  { %v82_v42 = vadd.f32 %v81_v41, %v80_v40 }
  0x50   :  { %v83_v43 = vrot.slane %v82_v42, 4 }
  0x52   :  { %v84_v44 = vadd.f32 %v83_v43, %v82_v42 }
  0x54   :  { %v85_v45 = vrot.slane %v84_v44, 2 }
  0x56   :  { %v86_v46 = vadd.f32 %v85_v45, %v84_v44 }
  0x58   :  { %v87_v47 = vrot.slane %v86_v46, 1 }
  0x5a   :  { %v88_v48 = vadd.f32 %v87_v47, %v86_v46 }
  0x5c   :  { %89 = vst [vmem:[#allocation7] sm:$0x1] %v88_v48 }
  0x5d   :  { %182 = shalt.err (!%p179_p6)
}
  0x5e   :  { %s183_s11 = scalar_lea.hbm %s257_s2, 16 }
  0x5f   :  { %p184_p7 = scmp.ne.s32.totalorder %s257_s2, %s183_s11  ;;  %p187_p8 = scmp.lt.u32.totalorder %s183_s11, %s257_s2 }
  0x61   :  { %p189_p9 = pnand %p187_p8, %p184_p7 }
  0x63   :  { %192 = shalt.err (!%p189_p9)
}
  0x64   :  { %99 = dma.vmem_to_hbm [thread:$0]  %s97_s6, 16, %s257_s2, [#allocation4]  }
  0x65   :  { %197 = dma.done.wait [#allocation4], 16  }
  0x66   :  { %198 = vsyncadd [#allocation4], 4294967280 }
  0x67   :  { %103 = vsyncpa [#allocation3], 1 }
  0x68   :  { %104 = vsyncpa [#allocation6], 1 }
  0x69   :  { %105 = vsyncpa [#allocation4], 1 }

</bundles_post_ra>
